<compile_context>
chip_gen: v7x
topology: tpu7x:2x2x1
jax: 0.10.0
libtpu: 0.0.40
codegen_flags: <defaults>
</compile_context>

<pallas_src>
import functools

import jax
import jax.numpy as jnp
from jax.experimental import pallas as pl
from jax.experimental.pallas import tpu as pltpu

LANES = 128  # vreg lane width


def _layer_dims(din):
    # Matches Model.__init__: Linear(din,5) -> Linear(5,3) -> Linear(3,1)
    return ((din, 5), (5, 3), (3, 1))


def mlp_kernel(wb_ref, x_ref, o_ref, *, dims):
    """One batch tile.

    wb_ref : flat f32 SMEM vector of [w1|b1|w2|b2|w3|b3]  (scalar-prefetched)
    x_ref  : (din, TILE_S, 128) VMEM  -- batch dense in sublanes AND lanes
    o_ref  : (1,  TILE_S, 128) VMEM
    """
    din = dims[0][0]
    rows = [x_ref[k] for k in range(din)]            # each (TILE_S, 128), dense vregs

    off = 0
    n_layers = len(dims)
    for li, (fin, fout) in enumerate(dims):
        last = li == n_layers - 1
        w_off = off
        b_off = off + fin * fout
        new_rows = []
        for j in range(fout):
            # Pure VPU FMAs against SMEM scalars; no MXU, no masked lanes.
            acc = rows[0] * wb_ref[w_off + j]
            for k in range(1, fin):
                acc = acc + rows[k] * wb_ref[w_off + k * fout + j]
            acc = acc + wb_ref[b_off + j]             # fold bias into the chain
            if last:
                # sigmoid(x) == 0.5*(tanh(0.5*x)+1): single EUP push + VALU fma
                new_rows.append(0.5 * (jnp.tanh(0.5 * acc) + 1.0))
            else:
                new_rows.append(jnp.tanh(acc))
        rows = new_rows
        off = b_off + fout

    o_ref[0] = rows[0].astype(o_ref.dtype)            # dense (TILE_S, 128) store


def _choose_tile_s(s):
    """Pick the sublane-group tile (each group = 128 batch elems).

    1024 groups -> ~1 MiB f32 input (din=2) + 0.5 MiB output per step; double
    buffered that's ~3 MiB, comfortably inside every generation's scoped VMEM,
    while the per-step HBM traffic dwarfs the ~0.35 us fixed grid overhead.
    """
    TILE = 1024
    if s <= TILE:
        # Single block spanning the full (padded) sublane axis; keep it a
        # multiple of 8 sublanes so the block obeys the (8,128) tiling rule.
        return max(8, ((s + 7) // 8) * 8)
    return TILE


def mlp_forward(x, params):
    """x: (B, din) float32. params: (w1, b1, w2, b2, w3, b3), w_i = torch W.T."""
    w1, b1, w2, b2, w3, b3 = params
    B, din = x.shape
    dims = _layer_dims(din)

    # All 37 weight/bias scalars in one flat f32 vector for SMEM scalar prefetch.
    wb = jnp.concatenate([
        w1.reshape(-1), b1.reshape(-1),
        w2.reshape(-1), b2.reshape(-1),
        w3.reshape(-1), b3.reshape(-1),
    ]).astype(jnp.float32)

    # Batch -> (sublane-group, lane) axes: (din, S, 128) dense slabs.
    s = pl.cdiv(B, LANES)
    tile_s = _choose_tile_s(s)
    s_pad = pl.cdiv(s, tile_s) * tile_s
    b_pad = s_pad * LANES

    # TODO(synk): accepting x already in (din, B) layout upstream would remove
    # this (single, fused) transpose+pad HBM pass entirely.
    x_t = jnp.transpose(x.astype(jnp.float32))        # (din, B)
    if b_pad != B:
        x_t = jnp.pad(x_t, ((0, 0), (0, b_pad - B)))
    x3 = x_t.reshape(din, s_pad, LANES)

    grid = (s_pad // tile_s,)
    kernel = functools.partial(mlp_kernel, dims=dims)

    out3 = pl.pallas_call(
        kernel,
        out_shape=jax.ShapeDtypeStruct((1, s_pad, LANES), jnp.float32),
        grid_spec=pltpu.PrefetchScalarGridSpec(
            num_scalar_prefetch=1,              # wb -> SMEM, passed first to kernel
            grid=grid,
            in_specs=[
                pl.BlockSpec((din, tile_s, LANES), lambda i, wb_ref: (0, i, 0)),
            ],
            out_specs=pl.BlockSpec((1, tile_s, LANES), lambda i, wb_ref: (0, i, 0)),
        ),
        compiler_params=pltpu.CompilerParams(
            # Batch tiles are independent -> megacore sharding on v7x (2 TCs).
            dimension_semantics=("parallel",),
        ),
    )(wb, x3)

    return out3.reshape(1, b_pad)[:, :B].T            # back to (B, 1)


def init_params(key, din):
    # Deterministic init mimicking torch.nn.Linear default (uniform +-1/sqrt(fan_in)).
    params = []
    for i, (fin, fout) in enumerate(_layer_dims(din)):
        kw, kb = jax.random.split(jax.random.fold_in(key, i))
        bound = 1.0 / jnp.sqrt(jnp.float32(fin))
        w = jax.random.uniform(kw, (fin, fout), jnp.float32, -bound, bound)
        b = jax.random.uniform(kb, (fout,), jnp.float32, -bound, bound)
        params += [w, b]
    return params


if __name__ == "__main__":
    key = jax.random.PRNGKey(0)
    din = 2          # "in or out of circle": (x, y) coordinates
    batch = 8        # small smoke-test batch; the kernel pays off at large batch

    kx, kp = jax.random.split(key)
    x = jax.random.normal(kx, (batch, din), jnp.float32)
    params = init_params(kp, din)

    out = mlp_forward(x, params)
    out = jax.block_until_ready(out)

    # Sanity-check against a pure-JAX reference of the same forward pass.
    w1, b1, w2, b2, w3, b3 = params
    ref = jax.nn.sigmoid(jnp.tanh(jnp.tanh(x @ w1 + b1) @ w2 + b2) @ w3 + b3)
    assert out.shape == (batch, 1)
    assert jnp.allclose(out, ref, atol=1e-5, rtol=1e-5)

    print("KERNEL_OK")
</pallas_src>

<mosaic_0001>
module attributes {stable_mosaic.version = 11 : i64} {
  func.func @mlp_kernel(%arg0: i32, %arg1: memref<37xf32, #tpu.memory_space<smem>>, %arg2: memref<2x8x128xf32, #tpu.memory_space<vmem>>, %arg3: memref<1x8x128xf32, #tpu.memory_space<vmem>>) attributes {dimension_semantics = [#tpu.dimension_semantics<parallel>], iteration_bounds = array<i64: 1>, scalar_prefetch = 1 : i64, scratch_operands = 0 : i64, tpu.core_type = #tpu.core_type<tc>, window_params = [{transform_indices = @transform_0, window_bounds = array<i64: 2, 8, 128>}, {transform_indices = @transform_1, window_bounds = array<i64: 1, 8, 128>}]} {
    %c0 = arith.constant 0 : index
    %c0_0 = arith.constant 0 : index
    %c0_1 = arith.constant 0 : index
    %0 = vector.load %arg2[%c0, %c0_0, %c0_1] : memref<2x8x128xf32, #tpu.memory_space<vmem>>, vector<1x8x128xf32>
    %1 = vector.shape_cast %0 : vector<1x8x128xf32> to vector<8x128xf32>
    %c1 = arith.constant 1 : index
    %c0_2 = arith.constant 0 : index
    %c0_3 = arith.constant 0 : index
    %2 = vector.load %arg2[%c1, %c0_2, %c0_3] : memref<2x8x128xf32, #tpu.memory_space<vmem>>, vector<1x8x128xf32>
    %3 = vector.shape_cast %2 : vector<1x8x128xf32> to vector<8x128xf32>
    %c0_4 = arith.constant 0 : index
    %4 = memref.load %arg1[%c0_4] : memref<37xf32, #tpu.memory_space<smem>>
    %5 = vector.broadcast %4 : f32 to vector<8x128xf32>
    %6 = arith.mulf %1, %5 : vector<8x128xf32>
    %c5 = arith.constant 5 : index
    %7 = memref.load %arg1[%c5] : memref<37xf32, #tpu.memory_space<smem>>
    %8 = vector.broadcast %7 : f32 to vector<8x128xf32>
    %9 = arith.mulf %3, %8 : vector<8x128xf32>
    %10 = arith.addf %6, %9 : vector<8x128xf32>
    %c10 = arith.constant 10 : index
    %11 = memref.load %arg1[%c10] : memref<37xf32, #tpu.memory_space<smem>>
    %12 = vector.broadcast %11 : f32 to vector<8x128xf32>
    %13 = arith.addf %10, %12 : vector<8x128xf32>
    %14 = math.tanh %13 : vector<8x128xf32>
    %c1_5 = arith.constant 1 : index
    %15 = memref.load %arg1[%c1_5] : memref<37xf32, #tpu.memory_space<smem>>
    %16 = vector.broadcast %15 : f32 to vector<8x128xf32>
    %17 = arith.mulf %1, %16 : vector<8x128xf32>
    %c6 = arith.constant 6 : index
    %18 = memref.load %arg1[%c6] : memref<37xf32, #tpu.memory_space<smem>>
    %19 = vector.broadcast %18 : f32 to vector<8x128xf32>
    %20 = arith.mulf %3, %19 : vector<8x128xf32>
    %21 = arith.addf %17, %20 : vector<8x128xf32>
    %c11 = arith.constant 11 : index
    %22 = memref.load %arg1[%c11] : memref<37xf32, #tpu.memory_space<smem>>
    %23 = vector.broadcast %22 : f32 to vector<8x128xf32>
    %24 = arith.addf %21, %23 : vector<8x128xf32>
    %25 = math.tanh %24 : vector<8x128xf32>
    %c2 = arith.constant 2 : index
    %26 = memref.load %arg1[%c2] : memref<37xf32, #tpu.memory_space<smem>>
    %27 = vector.broadcast %26 : f32 to vector<8x128xf32>
    %28 = arith.mulf %1, %27 : vector<8x128xf32>
    %c7 = arith.constant 7 : index
    %29 = memref.load %arg1[%c7] : memref<37xf32, #tpu.memory_space<smem>>
    %30 = vector.broadcast %29 : f32 to vector<8x128xf32>
    %31 = arith.mulf %3, %30 : vector<8x128xf32>
    %32 = arith.addf %28, %31 : vector<8x128xf32>
    %c12 = arith.constant 12 : index
    %33 = memref.load %arg1[%c12] : memref<37xf32, #tpu.memory_space<smem>>
    %34 = vector.broadcast %33 : f32 to vector<8x128xf32>
    %35 = arith.addf %32, %34 : vector<8x128xf32>
    %36 = math.tanh %35 : vector<8x128xf32>
    %c3 = arith.constant 3 : index
    %37 = memref.load %arg1[%c3] : memref<37xf32, #tpu.memory_space<smem>>
    %38 = vector.broadcast %37 : f32 to vector<8x128xf32>
    %39 = arith.mulf %1, %38 : vector<8x128xf32>
    %c8 = arith.constant 8 : index
    %40 = memref.load %arg1[%c8] : memref<37xf32, #tpu.memory_space<smem>>
    %41 = vector.broadcast %40 : f32 to vector<8x128xf32>
    %42 = arith.mulf %3, %41 : vector<8x128xf32>
    %43 = arith.addf %39, %42 : vector<8x128xf32>
    %c13 = arith.constant 13 : index
    %44 = memref.load %arg1[%c13] : memref<37xf32, #tpu.memory_space<smem>>
    %45 = vector.broadcast %44 : f32 to vector<8x128xf32>
    %46 = arith.addf %43, %45 : vector<8x128xf32>
    %47 = math.tanh %46 : vector<8x128xf32>
    %c4 = arith.constant 4 : index
    %48 = memref.load %arg1[%c4] : memref<37xf32, #tpu.memory_space<smem>>
    %49 = vector.broadcast %48 : f32 to vector<8x128xf32>
    %50 = arith.mulf %1, %49 : vector<8x128xf32>
    %c9 = arith.constant 9 : index
    %51 = memref.load %arg1[%c9] : memref<37xf32, #tpu.memory_space<smem>>
    %52 = vector.broadcast %51 : f32 to vector<8x128xf32>
    %53 = arith.mulf %3, %52 : vector<8x128xf32>
    %54 = arith.addf %50, %53 : vector<8x128xf32>
    %c14 = arith.constant 14 : index
    %55 = memref.load %arg1[%c14] : memref<37xf32, #tpu.memory_space<smem>>
    %56 = vector.broadcast %55 : f32 to vector<8x128xf32>
    %57 = arith.addf %54, %56 : vector<8x128xf32>
    %58 = math.tanh %57 : vector<8x128xf32>
    %c15 = arith.constant 15 : index
    %59 = memref.load %arg1[%c15] : memref<37xf32, #tpu.memory_space<smem>>
    %60 = vector.broadcast %59 : f32 to vector<8x128xf32>
    %61 = arith.mulf %14, %60 : vector<8x128xf32>
    %c18 = arith.constant 18 : index
    %62 = memref.load %arg1[%c18] : memref<37xf32, #tpu.memory_space<smem>>
    %63 = vector.broadcast %62 : f32 to vector<8x128xf32>
    %64 = arith.mulf %25, %63 : vector<8x128xf32>
    %65 = arith.addf %61, %64 : vector<8x128xf32>
    %c21 = arith.constant 21 : index
    %66 = memref.load %arg1[%c21] : memref<37xf32, #tpu.memory_space<smem>>
    %67 = vector.broadcast %66 : f32 to vector<8x128xf32>
    %68 = arith.mulf %36, %67 : vector<8x128xf32>
    %69 = arith.addf %65, %68 : vector<8x128xf32>
    %c24 = arith.constant 24 : index
    %70 = memref.load %arg1[%c24] : memref<37xf32, #tpu.memory_space<smem>>
    %71 = vector.broadcast %70 : f32 to vector<8x128xf32>
    %72 = arith.mulf %47, %71 : vector<8x128xf32>
    %73 = arith.addf %69, %72 : vector<8x128xf32>
    %c27 = arith.constant 27 : index
    %74 = memref.load %arg1[%c27] : memref<37xf32, #tpu.memory_space<smem>>
    %75 = vector.broadcast %74 : f32 to vector<8x128xf32>
    %76 = arith.mulf %58, %75 : vector<8x128xf32>
    %77 = arith.addf %73, %76 : vector<8x128xf32>
    %c30 = arith.constant 30 : index
    %78 = memref.load %arg1[%c30] : memref<37xf32, #tpu.memory_space<smem>>
    %79 = vector.broadcast %78 : f32 to vector<8x128xf32>
    %80 = arith.addf %77, %79 : vector<8x128xf32>
    %81 = math.tanh %80 : vector<8x128xf32>
    %c16 = arith.constant 16 : index
    %82 = memref.load %arg1[%c16] : memref<37xf32, #tpu.memory_space<smem>>
    %83 = vector.broadcast %82 : f32 to vector<8x128xf32>
    %84 = arith.mulf %14, %83 : vector<8x128xf32>
    %c19 = arith.constant 19 : index
    %85 = memref.load %arg1[%c19] : memref<37xf32, #tpu.memory_space<smem>>
    %86 = vector.broadcast %85 : f32 to vector<8x128xf32>
    %87 = arith.mulf %25, %86 : vector<8x128xf32>
    %88 = arith.addf %84, %87 : vector<8x128xf32>
    %c22 = arith.constant 22 : index
    %89 = memref.load %arg1[%c22] : memref<37xf32, #tpu.memory_space<smem>>
    %90 = vector.broadcast %89 : f32 to vector<8x128xf32>
    %91 = arith.mulf %36, %90 : vector<8x128xf32>
    %92 = arith.addf %88, %91 : vector<8x128xf32>
    %c25 = arith.constant 25 : index
    %93 = memref.load %arg1[%c25] : memref<37xf32, #tpu.memory_space<smem>>
    %94 = vector.broadcast %93 : f32 to vector<8x128xf32>
    %95 = arith.mulf %47, %94 : vector<8x128xf32>
    %96 = arith.addf %92, %95 : vector<8x128xf32>
    %c28 = arith.constant 28 : index
    %97 = memref.load %arg1[%c28] : memref<37xf32, #tpu.memory_space<smem>>
    %98 = vector.broadcast %97 : f32 to vector<8x128xf32>
    %99 = arith.mulf %58, %98 : vector<8x128xf32>
    %100 = arith.addf %96, %99 : vector<8x128xf32>
    %c31 = arith.constant 31 : index
    %101 = memref.load %arg1[%c31] : memref<37xf32, #tpu.memory_space<smem>>
    %102 = vector.broadcast %101 : f32 to vector<8x128xf32>
    %103 = arith.addf %100, %102 : vector<8x128xf32>
    %104 = math.tanh %103 : vector<8x128xf32>
    %c17 = arith.constant 17 : index
    %105 = memref.load %arg1[%c17] : memref<37xf32, #tpu.memory_space<smem>>
    %106 = vector.broadcast %105 : f32 to vector<8x128xf32>
    %107 = arith.mulf %14, %106 : vector<8x128xf32>
    %c20 = arith.constant 20 : index
    %108 = memref.load %arg1[%c20] : memref<37xf32, #tpu.memory_space<smem>>
    %109 = vector.broadcast %108 : f32 to vector<8x128xf32>
    %110 = arith.mulf %25, %109 : vector<8x128xf32>
    %111 = arith.addf %107, %110 : vector<8x128xf32>
    %c23 = arith.constant 23 : index
    %112 = memref.load %arg1[%c23] : memref<37xf32, #tpu.memory_space<smem>>
    %113 = vector.broadcast %112 : f32 to vector<8x128xf32>
    %114 = arith.mulf %36, %113 : vector<8x128xf32>
    %115 = arith.addf %111, %114 : vector<8x128xf32>
    %c26 = arith.constant 26 : index
    %116 = memref.load %arg1[%c26] : memref<37xf32, #tpu.memory_space<smem>>
    %117 = vector.broadcast %116 : f32 to vector<8x128xf32>
    %118 = arith.mulf %47, %117 : vector<8x128xf32>
    %119 = arith.addf %115, %118 : vector<8x128xf32>
    %c29 = arith.constant 29 : index
    %120 = memref.load %arg1[%c29] : memref<37xf32, #tpu.memory_space<smem>>
    %121 = vector.broadcast %120 : f32 to vector<8x128xf32>
    %122 = arith.mulf %58, %121 : vector<8x128xf32>
    %123 = arith.addf %119, %122 : vector<8x128xf32>
    %c32 = arith.constant 32 : index
    %124 = memref.load %arg1[%c32] : memref<37xf32, #tpu.memory_space<smem>>
    %125 = vector.broadcast %124 : f32 to vector<8x128xf32>
    %126 = arith.addf %123, %125 : vector<8x128xf32>
    %127 = math.tanh %126 : vector<8x128xf32>
    %c33 = arith.constant 33 : index
    %128 = memref.load %arg1[%c33] : memref<37xf32, #tpu.memory_space<smem>>
    %129 = vector.broadcast %128 : f32 to vector<8x128xf32>
    %130 = arith.mulf %81, %129 : vector<8x128xf32>
    %c34 = arith.constant 34 : index
    %131 = memref.load %arg1[%c34] : memref<37xf32, #tpu.memory_space<smem>>
    %132 = vector.broadcast %131 : f32 to vector<8x128xf32>
    %133 = arith.mulf %104, %132 : vector<8x128xf32>
    %134 = arith.addf %130, %133 : vector<8x128xf32>
    %c35 = arith.constant 35 : index
    %135 = memref.load %arg1[%c35] : memref<37xf32, #tpu.memory_space<smem>>
    %136 = vector.broadcast %135 : f32 to vector<8x128xf32>
    %137 = arith.mulf %127, %136 : vector<8x128xf32>
    %138 = arith.addf %134, %137 : vector<8x128xf32>
    %c36 = arith.constant 36 : index
    %139 = memref.load %arg1[%c36] : memref<37xf32, #tpu.memory_space<smem>>
    %140 = vector.broadcast %139 : f32 to vector<8x128xf32>
    %141 = arith.addf %138, %140 : vector<8x128xf32>
    %cst = arith.constant 5.000000e-01 : f32
    %142 = vector.broadcast %cst : f32 to vector<8x128xf32>
    %143 = arith.mulf %142, %141 : vector<8x128xf32>
    %144 = math.tanh %143 : vector<8x128xf32>
    %cst_6 = arith.constant 1.000000e+00 : f32
    %145 = vector.broadcast %cst_6 : f32 to vector<8x128xf32>
    %146 = arith.addf %144, %145 : vector<8x128xf32>
    %cst_7 = arith.constant 5.000000e-01 : f32
    %147 = vector.broadcast %cst_7 : f32 to vector<8x128xf32>
    %148 = arith.mulf %147, %146 : vector<8x128xf32>
    %c0_8 = arith.constant 0 : index
    %c0_9 = arith.constant 0 : index
    %c0_10 = arith.constant 0 : index
    %149 = vector.load %arg3[%c0_8, %c0_9, %c0_10] : memref<1x8x128xf32, #tpu.memory_space<vmem>>, vector<1x8x128xf32>
    %150 = vector.shape_cast %149 : vector<1x8x128xf32> to vector<8x128xf32>
    %151 = vector.shape_cast %148 : vector<8x128xf32> to vector<1x8x128xf32>
    tpu.vector_store %arg3[%c0_8, %c0_9, %c0_10], %151 {strides = array<i32>} : memref<1x8x128xf32, #tpu.memory_space<vmem>>, vector<1x8x128xf32>,
    return
  }
  func.func @transform_0(%arg0: i32, %arg1: memref<37xf32, #tpu.memory_space<smem>>) -> (i32, i32, i32) {
    %c0_i32 = arith.constant 0 : i32
    %c0_i32_0 = arith.constant 0 : i32
    %c0_i32_1 = arith.constant 0 : i32
    return %c0_i32, %arg0, %c0_i32_0 : i32, i32, i32
  }
  func.func @transform_1(%arg0: i32, %arg1: memref<37xf32, #tpu.memory_space<smem>>) -> (i32, i32, i32) {
    %c0_i32 = arith.constant 0 : i32
    %c0_i32_0 = arith.constant 0 : i32
    %c0_i32_1 = arith.constant 0 : i32
    return %c0_i32, %arg0, %c0_i32_0 : i32, i32, i32
  }
}

</mosaic_0001>

<bundles_post_ra>
// kernel: tpu_custom_call.1
= control target key start
LH: loop header
LB: loop body
LE: loop exit
PB: predicated region body
PF: predicated region fallthrough
CT: control target
= control target key end

     0   :  { %s436_s0 = inlined_call_operand.hbm [shape: f32[37], index: 0, kind: input, shape index: {}]   ;;  %s437_s1 = inlined_call_operand.hbm [shape: f32[2,8,128], index: 1, kind: input, shape index: {}]   ;;  %s438_s2 = inlined_call_operand.hbm [shape: f32[1,8,128], index: 2, kind: output, shape index: {}]  }
   0x1   :  { %s248_s11 = scalar_lea.hbm %s436_s0, 16 }
   0x2   :  { %p249_p0 = scmp.ne.s32.totalorder %s436_s0, %s248_s11  ;;  %p252_p1 = scmp.lt.u32.totalorder %s248_s11, %s436_s0 }
   0x4   :  { %p254_p2 = pnand %p252_p1, %p249_p0 }
   0x6   :  { %257 = shalt.err (!%p254_p2)  }
   0x7   :  { %s308_s16 = smov [#allocation3]  }
   0x8   :  { %8 = dma.hbm_to_smem %s436_s0, 16, %s308_s16, [#allocation2] }
   0x9   :  { %302 = dma.done.wait [#allocation2], 16 }
   0xa   :  { %303 = vsyncadd [#allocation2], 4294967280 }
   0xb   :  { %10 = sfence }
   0xc   :  { %11 = vsyncpa [#allocation5], 0 }
   0xd   :  { %12 = vsyncpa [#allocation6], 0  ;;  %s309_s19 = smov [#allocation4]   ;;  %s258_s23 = scalar_lea.hbm %s437_s1, 256 }
   0xe   :  { %s18_s20 = sshll.u32 %s309_s19, 4  ;;  %p259_p3 = scmp.ne.s32.totalorder %s437_s1, %s258_s23  ;;  %s19_s20 = int_to_ptr.vmem [resolvable:$true] %s18_s20 }
   0xf   :  { %p262_p4 = scmp.lt.u32.totalorder %s258_s23, %s437_s1 }
  0x11   :  { %p264_p5 = pnand %p262_p4, %p259_p3 }
  0x13   :  { %267 = shalt.err (!%p264_p5)
}
  0x14   :  { %s268_s0 = scalar_lea.vmem %s19_s20, 256  ;;  %p273_p7 = scmp.lt.s32.totalorder %s19_s20, %s19_s20 }
  0x15   :  { %p269_p6 = scmp.ne.s32.totalorder %s19_s20, %s268_s0  ;;  %p274_p8 = scmp.lt.s32.totalorder %s268_s0, %s268_s0 }
  0x17   :  { %p275_p9 = por %p274_p8, %p273_p7 }
  0x19   :  { %p276_p10 = pnand %p275_p9, %p269_p6 }
  0x1b   :  { %279 = shalt.err (!%p276_p10)
}
  0x1c   :  { %s310_s28 = smov 128   ;;  %s311_s29 = smov 8  }
  0x1d   :  { %24 = dma.hbm_to_vmem [thread:$0]  %s437_s1, 256, %s19_s20, [#allocation5], %s310_s28, %s310_s28, %s311_s29  }
  0x1e   :  { %304 = dma.done.wait [#allocation5], 256  }
  0x1f   :  { %305 = vsyncadd [#allocation5], 4294967040  ;;  %s31_s4 = sld [smem:[#allocation3]]  ;;  %s189_s5 = sld [smem:[#allocation3 + $0x5]]  ;;  %v28_v0 = vld [vmem:[#allocation4] sm:$0xff]  ;;  %v30_v1 = vld [vmem:[#allocation4 + $0x8] sm:$0xff] }
  0x20   :  { %s352_s6 = sld [smem:[#allocation3 + $0xa]]  ;;  %s191_s7 = sld [smem:[#allocation3 + $0x1]] }
  0x21   :  { %s192_s8 = sld [smem:[#allocation3 + $0x6]]  ;;  %s354_s9 = sld [smem:[#allocation3 + $0xb]] }
  0x22   :  { %s194_s10 = sld [smem:[#allocation3 + $0x2]]  ;;  %s195_s11 = sld [smem:[#allocation3 + $0x7]] }
  0x23   :  { %s356_s12 = sld [smem:[#allocation3 + $0xc]]  ;;  %s197_s13 = sld [smem:[#allocation3 + $0x3]] }
  0x24   :  { %s198_s14 = sld [smem:[#allocation3 + $0x8]]  ;;  %s358_s15 = sld [smem:[#allocation3 + $0xd]] }
  0x25   :  { %v32_v2 = vstv %s31_s4  ;;  %v35_v3 = vstv %s189_s5  ;;  %s200_s1 = sld [smem:[#allocation3 + $0x4]]  ;;  %s360_s16 = sld [smem:[#allocation3 + $0x9]] }
  0x26   :  { %v33_v4 = vmul.f32 %v32_v2, %v28_v0  ;;  %v36_v5 = vmul.f32 %v35_v3, %v30_v1  ;;  %v43_v6 = vstv %s191_s7  ;;  %s362_s17 = sld [smem:[#allocation3 + $0xe]]  ;;  %v39_v7 = vstv %s352_s6  ;;  %s368_s18 = sld [smem:[#allocation3 + $0xf]] }
  0x27   :  { %v44_v8 = vmul.f32 %v43_v6, %v28_v0  ;;  %v46_v9 = vstv %s192_s8  ;;  %v50_v10 = vstv %s354_s9  ;;  %s370_s19 = sld [smem:[#allocation3 + $0x12]]  ;;  %s373_s20 = sld [smem:[#allocation3 + $0x10]] }
  0x28   :  { %v37_v11 = vadd.f32 %v36_v5, %v33_v4  ;;  %v47_v12 = vmul.f32 %v46_v9, %v30_v1  ;;  %v54_v13 = vstv %s194_s10  ;;  %v57_v14 = vstv %s195_s11  ;;  %s375_s21 = sld [smem:[#allocation3 + $0x11]]  ;;  %s377_s22 = sld [smem:[#allocation3 + $0x15]] }
  0x29   :  { %v55_v15 = vmul.f32 %v54_v13, %v28_v0  ;;  %v58_v16 = vmul.f32 %v57_v14, %v30_v1  ;;  %v61_v17 = vstv %s356_s12  ;;  %v65_v18 = vstv %s197_s13  ;;  %s379_s23 = sld [smem:[#allocation3 + $0x13]]  ;;  %s382_s24 = sld [smem:[#allocation3 + $0x16]] }
  0x2a   :  { %v40_v19 = vadd.f32 %v39_v7, %v37_v11  ;;  %v48_v20 = vadd.f32 %v47_v12, %v44_v8  ;;  %v66_v21 = vmul.f32 %v65_v18, %v28_v0  ;;  %v68_v22 = vstv %s198_s14  ;;  %s384_s25 = sld [smem:[#allocation3 + $0x14]]  ;;  %s386_s26 = sld [smem:[#allocation3 + $0x18]] }
  0x2b   :  { %v59_v23 = vadd.f32 %v58_v16, %v55_v15  ;;  %v69_v24 = vmul.f32 %v68_v22, %v30_v1  ;;  %v72_v25 = vstv %s358_s15  ;;  %v76_v26 = vstv %s200_s1  ;;  %s388_s27 = sld [smem:[#allocation3 + $0x17]]  ;;  %s390_s0 = sld [smem:[#allocation3 + $0x1b]] }
  0x2c   :  { %230 = vtanh.f32 %v40_v19  ;;  %v51_v27 = vadd.f32 %v50_v10, %v48_v20  ;;  %v77_v28 = vmul.f32 %v76_v26, %v28_v0  ;;  %v79_v29 = vstv %s360_s16  ;;  %s392_s28 = sld [smem:[#allocation3 + $0x19]]  ;;  %s394_s29 = sld [smem:[#allocation3 + $0x1a]] }
  0x2d   :  { %v62_v30 = vadd.f32 %v61_v17, %v59_v23  ;;  %v70_v31 = vadd.f32 %v69_v24, %v66_v21  ;;  %v80_v32 = vmul.f32 %v79_v29, %v30_v1  ;;  %v83_v33 = vstv %s362_s17  ;;  %s396_s30 = sld [smem:[#allocation3 + $0x1c]]  ;;  %s398_s3 = sld [smem:[#allocation3 + $0x1d]] }
  0x2e   :  { %232 = vtanh.f32 %v51_v27  ;;  %v87_v37 = vstv %s368_s18  ;;  %v110_v38 = vstv %s373_s20  ;;  %v133_v39 = vstv %s375_s21  ;;  %s408_s4 = sld [smem:[#allocation3 + $0x1e]]  ;;  %s414_s5 = sld [smem:[#allocation3 + $0x1f]] }
  0x2f   :  { %234 = vtanh.f32 %v62_v30  ;;  %v73_v34 = vadd.f32 %v72_v25, %v70_v31  ;;  %v81_v35 = vadd.f32 %v80_v32, %v77_v28  ;;  %v90_v40 = vstv %s370_s19  ;;  %s416_s6 = sld [smem:[#allocation3 + $0x20]]  ;;  %s221_s7 = sld [smem:[#allocation3 + $0x21]] }
  0x30   :  { %v94_v42 = vstv %s377_s22  ;;  %v113_v43 = vstv %s379_s23  ;;  %v117_v44 = vstv %s382_s24  ;;  %v136_v45 = vstv %s384_s25  ;;  %s222_s8 = sld [smem:[#allocation3 + $0x22]]  ;;  %s223_s9 = sld [smem:[#allocation3 + $0x23]] }
  0x31   :  { %236 = vtanh.f32 %v73_v34  ;;  %v84_v36 = vadd.f32 %v83_v33, %v81_v35  ;;  %v140_v49 = vstv %s388_s27  ;;  %v98_v51 = vstv %s386_s26  ;;  %s224_s10 = sld [smem:[#allocation3 + $0x24]]  ;;  %s312_s11 = smov [#allocation7]  }
  0x32   :  { %v102_v52 = vstv %s390_s0  ;;  %v121_v53 = vstv %s392_s28  ;;  %v144_v58 = vstv %s394_s29  ;;  %s180_s12 = sshll.u32 %s312_s11, 4  ;;  %s181_s12 = int_to_ptr.vmem [resolvable:$true] %s180_s12 }
  0x33   :  { %238 = vtanh.f32 %v84_v36  ;;  %v125_v61 = vstv %s396_s30  ;;  %v148_v3 = vstv %s398_s3  ;;  %s280_s13 = scalar_lea.vmem %s181_s12, 128  ;;  %p285_p12 = scmp.lt.s32.totalorder %s181_s12, %s181_s12 }
  0x34   :  { %v106_v17 = vstv %s408_s4  ;;  %v129_v18 = vstv %s414_s5  ;;  %p281_p11 = scmp.ne.s32.totalorder %s181_s12, %s280_s13  ;;  %p286_p13 = scmp.lt.s32.totalorder %s280_s13, %s280_s13 }
  0x35   :  { %v152_v19 = vstv %s416_s6  ;;  %v156_v26 = vstv %s221_s7 }
  0x36   :  { %v231_v41 = vpop.eup %230  ;;  %v159_v27 = vstv %s222_s8  ;;  %v163_v29 = vstv %s223_s9  ;;  %p287_p0 = por %p286_p13, %p285_p12 }
  0x37   :  { %v88_v46 = vmul.f32 %v231_v41, %v87_v37  ;;  %v111_v47 = vmul.f32 %v231_v41, %v110_v38  ;;  %v134_v48 = vmul.f32 %v231_v41, %v133_v39  ;;  %v167_v36 = vstv %s224_s10 }
  0x38   :  { %v233_v50 = vpop.eup %232  ;;  %p288_p1 = pnand %p287_p0, %p281_p11 }
  0x39   :  { %v235_v54 = vpop.eup %234  ;;  %v91_v55 = vmul.f32 %v233_v50, %v90_v40  ;;  %v114_v56 = vmul.f32 %v233_v50, %v113_v43  ;;  %v137_v57 = vmul.f32 %v233_v50, %v136_v45 }
  0x3a   :  { %v95_v59 = vmul.f32 %v235_v54, %v94_v42  ;;  %v118_v60 = vmul.f32 %v235_v54, %v117_v44  ;;  %v141_v62 = vmul.f32 %v235_v54, %v140_v49 }
  0x3b   :  { %v237_v63 = vpop.eup %236  ;;  %v92_v0 = vadd.f32 %v91_v55, %v88_v46  ;;  %v115_v1 = vadd.f32 %v114_v56, %v111_v47  ;;  %v138_v2 = vadd.f32 %v137_v57, %v134_v48 }
  0x3c   :  { %v99_v4 = vmul.f32 %v237_v63, %v98_v51  ;;  %v122_v5 = vmul.f32 %v237_v63, %v121_v53  ;;  %v145_v6 = vmul.f32 %v237_v63, %v144_v58 }
  0x3d   :  { %v239_v7 = vpop.eup %238  ;;  %v96_v8 = vadd.f32 %v95_v59, %v92_v0  ;;  %v119_v9 = vadd.f32 %v118_v60, %v115_v1  ;;  %v142_v10 = vadd.f32 %v141_v62, %v138_v2 }
  0x3e   :  { %v103_v11 = vmul.f32 %v239_v7, %v102_v52  ;;  %v126_v12 = vmul.f32 %v239_v7, %v125_v61  ;;  %v149_v13 = vmul.f32 %v239_v7, %v148_v3 }
  0x3f   :  { %v100_v14 = vadd.f32 %v99_v4, %v96_v8  ;;  %v123_v15 = vadd.f32 %v122_v5, %v119_v9  ;;  %v146_v16 = vadd.f32 %v145_v6, %v142_v10 }
  0x41   :  { %v104_v20 = vadd.f32 %v103_v11, %v100_v14  ;;  %v127_v21 = vadd.f32 %v126_v12, %v123_v15  ;;  %v150_v22 = vadd.f32 %v149_v13, %v146_v16 }
  0x43   :  { %v107_v23 = vadd.f32 %v106_v17, %v104_v20  ;;  %v130_v24 = vadd.f32 %v129_v18, %v127_v21  ;;  %v153_v25 = vadd.f32 %v152_v19, %v150_v22 }
  0x45   :  { %240 = vtanh.f32 %v107_v23 }
  0x46   :  { %242 = vtanh.f32 %v130_v24 }
  0x47   :  { %244 = vtanh.f32 %v153_v25 }
  0x4f   :  { %v241_v28 = vpop.eup %240 }
  0x50   :  { %v243_v30 = vpop.eup %242  ;;  %v157_v31 = vmul.f32 %v241_v28, %v156_v26 }
  0x51   :  { %v245_v32 = vpop.eup %244  ;;  %v160_v33 = vmul.f32 %v243_v30, %v159_v27 }
  0x52   :  { %v164_v34 = vmul.f32 %v245_v32, %v163_v29 }
  0x53   :  { %v161_v35 = vadd.f32 %v160_v33, %v157_v31 }
  0x55   :  { %v165_v37 = vadd.f32 %v164_v34, %v161_v35 }
  0x57   :  { %v168_v38 = vadd.f32 %v167_v36, %v165_v37 }
  0x59   :  { %v169_v39 = vmul.f32 0.5, %v168_v38 }
  0x5b   :  { %246 = vtanh.f32 %v169_v39 }
  0x65   :  { %v247_v40 = vpop.eup %246 }
  0x66   :  { %v171_v41 = vadd.f32 1.0, %v247_v40 }
  0x68   :  { %v172_v42 = vmul.f32 0.5, %v171_v41 }
  0x6a   :  { %173 = vst [vmem:[#allocation7] sm:$0xff] %v172_v42 }
  0x6b   :  { %291 = shalt.err (!%p288_p1)
}
  0x6c   :  { %s292_s1 = scalar_lea.hbm %s438_s2, 128 }
  0x6d   :  { %p293_p2 = scmp.ne.s32.totalorder %s438_s2, %s292_s1  ;;  %p296_p3 = scmp.lt.u32.totalorder %s292_s1, %s438_s2 }
  0x6f   :  { %p298_p4 = pnand %p296_p3, %p293_p2 }
  0x71   :  { %301 = shalt.err (!%p298_p4)
}
  0x72   :  { %183 = dma.vmem_to_hbm [thread:$0]  %s181_s12, 128, %s438_s2, [#allocation6]  }
  0x73   :  { %306 = dma.done.wait [#allocation6], 128  }
  0x74   :  { %307 = vsyncadd [#allocation6], 4294967168 }
  0x75   :  { %187 = vsyncpa [#allocation5], 1 }
  0x76   :  { %188 = vsyncpa [#allocation6], 1 }

</bundles_post_ra>
